<compile_context>
chip_gen: v5e
topology: v5e:2x2
jax: 0.10.0
libtpu: 0.0.40
codegen_flags: <defaults>
</compile_context>

<pallas_src>
import functools

import jax
import jax.numpy as jnp
from jax.experimental import pallas as pl
from jax.experimental.pallas import tpu as pltpu


# ---------------------------------------------------------------------------
# Tiling helpers
# ---------------------------------------------------------------------------

def _choose_tile(s, cap=16384):
    """Lane-dense spatial tile: 128 * 2^k, >= min(s, cap) (so tiny inputs get a
    single tile), capped at `cap`.  Power-of-two multiple of 128 so the
    in-kernel lane folding uses only 128-aligned slices."""
    t = 128
    while t < min(s, cap):
        t *= 2
    return min(t, cap)


def _pad_spatial(a, s_pad):
    """Zero-pad the last (spatial) axis of (N, C, S) up to s_pad."""
    s = a.shape[-1]
    if s == s_pad:
        return a
    return jnp.pad(a, ((0, 0), (0, 0), (0, s_pad - s)))


# ---------------------------------------------------------------------------
# In-kernel compute bodies
# ---------------------------------------------------------------------------

def _conv1x1_body(x, w, b):
    """relu(w @ x + b) as an unrolled VPU broadcast-FMA over the (tiny) Cin.

    x: (Cin, TS)  w: (Cout, Cin)  b: (Cout, 1)  ->  (Cout, TS) f32.
    Avoids a K=Cin(=4) MXU matmul; spatial dim TS stays in lanes (dense).
    """
    cin = x.shape[0]
    y = w[:, 0:1] * x[0:1, :]
    for c in range(1, cin):               # static unroll (Cin is small/static)
        y = y + w[:, c:c + 1] * x[c:c + 1, :]
    return jnp.maximum(y + b, 0.0)


def _fold_lanes_128(v):
    """(C, T) -> (C, 128) by summing 128-wide lane chunks with log-depth VPU
    adds (T/128 is a power of two by tile construction, so every slice stays
    on a lane-tile boundary).  Defers the cross-lane reduce out of the kernel."""
    t = v.shape[-1]
    while t > 128:
        h = t // 2
        v = v[:, :h] + v[:, h:]
        t = h
    return v


# ---------------------------------------------------------------------------
# Pallas kernels
# ---------------------------------------------------------------------------

def _feat_kernel(x_ref, w_ref, b_ref, o_ref):
    """Inference feature extraction.  Blocks: x (1,Cin,TS), o (1,Cout,TS)."""
    o_ref[0] = _conv1x1_body(x_ref[0], w_ref[...], b_ref[...])


def _fused_train_kernel(x_ref, w_ref, b_ref, t_ref, out_ref, *,
                        ts, s_actual, needs_mask):
    """Fused training path: conv1x1 -> loss maps -> lane-dense partial sums.

    Grid = (N, S_tiles).  The single output is a per-image (1, 3, Cout, 128)
    accumulator block (index depends only on n), revisited across the
    "arbitrary" spatial axis; loss maps never touch HBM and the only
    cross-lane reduce happens outside Pallas on a tiny array.
    """
    j = pl.program_id(1)

    @pl.when(j == 0)
    def _init():
        out_ref[...] = jnp.zeros_like(out_ref)

    f = _conv1x1_body(x_ref[0], w_ref[...], b_ref[...])        # (Cout, TS) f32
    t = t_ref[0].astype(jnp.float32)                           # bf16 -> f32
    d = f - t
    pos_map = (f > 0.0).astype(jnp.float32)

    if needs_mask:                                             # static branch
        pos = j * ts + jax.lax.broadcasted_iota(jnp.int32, (1, ts), 1)
        valid = pos < s_actual                                 # (1, TS)
        d = jnp.where(valid, d, 0.0)
        pos_map = jnp.where(valid, pos_map, 0.0)

    out_ref[0, 0, :, :] += _fold_lanes_128(d * d)              # squared error
    out_ref[0, 1, :, :] += _fold_lanes_128(jnp.abs(d))         # L1 error
    out_ref[0, 2, :, :] += _fold_lanes_128(pos_map)            # "accuracy"


# ---------------------------------------------------------------------------
# Thin wrappers around pallas_call
# ---------------------------------------------------------------------------

_VMEM_LIMIT = 32 * 1024 * 1024   # raises v5e's 16 MiB default; no-op on v6e/v7x


def pallas_conv1x1_nchw(x, w, b):
    """x: (N, Cin, S) -> relu(1x1 conv) features (N, Cout, S), f32."""
    n, cin, s = x.shape
    cout = w.shape[0]
    ts = _choose_tile(s)
    s_pad = pl.cdiv(s, ts) * ts
    xp = _pad_spatial(x.astype(jnp.float32), s_pad)
    grid = (n, s_pad // ts)
    out = pl.pallas_call(
        _feat_kernel,
        out_shape=jax.ShapeDtypeStruct((n, cout, s_pad), jnp.float32),
        grid=grid,
        in_specs=[
            pl.BlockSpec((1, cin, ts), lambda i, j: (i, 0, j)),
            pl.BlockSpec((cout, cin), lambda i, j: (0, 0)),   # resident weight
            pl.BlockSpec((cout, 1), lambda i, j: (0, 0)),     # resident bias
        ],
        out_specs=pl.BlockSpec((1, cout, ts), lambda i, j: (i, 0, j)),
        compiler_params=pltpu.CompilerParams(
            dimension_semantics=("parallel", "parallel"),
            vmem_limit_bytes=_VMEM_LIMIT),
    )(xp, w.astype(jnp.float32), b.reshape(cout, 1).astype(jnp.float32))
    return out[:, :, :s] if s_pad != s else out


def pallas_fused_train_sums(x, w, b, target):
    """Fused conv1x1 + loss maps + tiled, deferred partial reduction.

    x: (N, Cin, S), target: (N, Cout, S).
    Returns (sq_sum, l1_sum, acc_sum), each shape (N,) f32 - per-image sums
    over Cout*S valid elements.  Only a tiny (N,3,Cout,128) cross-lane reduce
    and O(N)-scalar combines remain outside Pallas.
    """
    n, cin, s = x.shape
    cout = w.shape[0]
    ts = _choose_tile(s)
    s_pad = pl.cdiv(s, ts) * ts
    needs_mask = (s_pad != s)
    xp = _pad_spatial(x.astype(jnp.float32), s_pad)
    tp = _pad_spatial(target.astype(jnp.bfloat16), s_pad)      # halve HBM read
    grid = (n, s_pad // ts)

    kernel = functools.partial(_fused_train_kernel,
                               ts=ts, s_actual=s, needs_mask=needs_mask)
    out = pl.pallas_call(
        kernel,
        out_shape=jax.ShapeDtypeStruct((n, 3, cout, 128), jnp.float32),
        grid=grid,
        in_specs=[
            pl.BlockSpec((1, cin, ts), lambda i, j: (i, 0, j)),
            pl.BlockSpec((cout, cin), lambda i, j: (0, 0)),
            pl.BlockSpec((cout, 1), lambda i, j: (0, 0)),
            pl.BlockSpec((1, cout, ts), lambda i, j: (i, 0, j)),
        ],
        out_specs=pl.BlockSpec((1, 3, cout, 128), lambda i, j: (i, 0, 0, 0)),
        compiler_params=pltpu.CompilerParams(
            dimension_semantics=("parallel", "arbitrary"),
            vmem_limit_bytes=_VMEM_LIMIT),
    )(xp, w.astype(jnp.float32), b.reshape(cout, 1).astype(jnp.float32), tp)

    sums = jnp.sum(out, axis=(2, 3))                            # (N, 3), tiny
    return sums[:, 0], sums[:, 1], sums[:, 2]


# ---------------------------------------------------------------------------
# BaseDetector (JAX / Pallas version)
# ---------------------------------------------------------------------------

class BaseDetectorPallas:
    """Mirrors mmdet BaseDetector forward()/forward_test()/_parse_losses()/train_step()."""

    def __init__(self, c_in=4, c_out=32, key=None):
        self.fp16_enabled = False
        key = jax.random.PRNGKey(0) if key is None else key
        kw, kb = jax.random.split(key)
        # Synthetic 1x1-conv backbone parameters (Cout x Cin layout).
        self.w = jax.random.normal(kw, (c_out, c_in), jnp.float32) * 0.1
        self.b = jax.random.normal(kb, (c_out,), jnp.float32) * 0.01
        self.c_in = c_in
        self.c_out = c_out
        # Compiled hot paths (one executable per input shape).
        self._feat_jit = jax.jit(self._extract_feat_impl)
        self._train_jit = jax.jit(self._forward_train_impl)

    # ------------------------- abstract hooks (synthetic) --------------------
    def _extract_feat_impl(self, img):
        n, c, h, w_ = img.shape
        x = img.reshape(n, c, h * w_)            # free reshape, NCHW preserved
        feat = pallas_conv1x1_nchw(x, self.w, self.b)
        return feat.reshape(n, self.c_out, h, w_)

    def extract_feat(self, img):
        """img: (N, C, H, W) NCHW -> feature maps (N, C_out, H, W)."""
        return self._feat_jit(img)

    def extract_feats(self, imgs):
        assert isinstance(imgs, list)
        return [self.extract_feat(img) for img in imgs]

    def _forward_train_impl(self, img):
        """Synthetic heads, fully fused: conv -> loss maps -> sums in one kernel."""
        n, c, h, w_ = img.shape
        s = h * w_
        x = img.reshape(n, c, s)
        # Deterministic synthetic regression target (bf16-streamed in kernel).
        target = jax.random.normal(jax.random.PRNGKey(42),
                                   (n, self.c_out, s), jnp.float32)
        sq_sum, l1_sum, acc_sum = pallas_fused_train_sums(x, self.w, self.b, target)

        per_img = float(self.c_out * s)
        half = n // 2
        # Reduced semantics:
        #   loss_cls  = mean(squared-error map)         (Tensor branch)
        #   loss_bbox = [mean(l1 first-half imgs), mean(l1 second-half)] (list branch)
        #   acc       = mean(feature > 0)               (logged, not summed)
        loss_cls = jnp.sum(sq_sum) / (per_img * n)
        loss_bbox = [jnp.sum(l1_sum[:half]) / (per_img * max(half, 1)),
                     jnp.sum(l1_sum[half:]) / (per_img * max(n - half, 1))]
        acc = jnp.sum(acc_sum) / (per_img * n)
        return {"loss_cls": loss_cls, "loss_bbox": loss_bbox, "acc": acc}

    def forward_train(self, img, img_metas, **kwargs):
        return self._train_jit(img)

    def simple_test(self, img, img_metas, **kwargs):
        # Minimal concrete test path: return backbone features (synthetic head).
        return self.extract_feat(img)

    def aug_test(self, imgs, img_metas, **kwargs):
        # TODO(synk): test-time augmentation fusion has no defined semantics in the base class.
        raise NotImplementedError

    # ------------------------- concrete BaseDetector logic -------------------
    def forward_test(self, imgs, img_metas, **kwargs):
        for var, name in [(imgs, "imgs"), (img_metas, "img_metas")]:
            if not isinstance(var, list):
                raise TypeError(f"{name} must be a list, but got {type(var)}")
        num_augs = len(imgs)
        if num_augs != len(img_metas):
            raise ValueError(
                f"num of augmentations ({len(imgs)}) != num of image meta ({len(img_metas)})")
        samples_per_gpu = imgs[0].shape[0]
        assert samples_per_gpu == 1
        if num_augs == 1:
            if "proposals" in kwargs:
                kwargs["proposals"] = kwargs["proposals"][0]
            return self.simple_test(imgs[0], img_metas[0], **kwargs)
        else:
            assert "proposals" not in kwargs
            return self.aug_test(imgs, img_metas, **kwargs)

    def forward(self, img, img_metas, return_loss=True, **kwargs):
        if return_loss:
            return self.forward_train(img, img_metas, **kwargs)
        else:
            return self.forward_test(img, img_metas, **kwargs)

    def __call__(self, **data):
        return self.forward(**data)

    def _parse_losses(self, losses):
        log_vars = {}
        for loss_name, loss_value in losses.items():
            if isinstance(loss_value, (list, tuple)):
                log_vars[loss_name] = sum(jnp.mean(v) for v in loss_value)
            elif hasattr(loss_value, "shape"):
                # Heavy per-element reductions are fused into the training
                # kernel, so these arrive already reduced; mean() on a scalar
                # is the identity (keeps the BaseDetector contract).
                log_vars[loss_name] = jnp.mean(loss_value)
            else:
                raise TypeError(f"{loss_name} is not a tensor or list of tensors")
        loss = sum(v for k, v in log_vars.items() if "loss" in k)
        log_vars["loss"] = loss
        # TODO(synk): torch.distributed all_reduce of log_vars has no single-device equivalent.
        # One batched device->host transfer instead of a blocking sync per var.
        host_vals = jax.device_get(log_vars)
        log_vars = {k: float(v) for k, v in host_vals.items()}
        return loss, log_vars

    def train_step(self, data, optimizer=None):
        losses = self(**data)
        loss, log_vars = self._parse_losses(losses)
        return dict(loss=loss, log_vars=log_vars, num_samples=len(data["img_metas"]))

    def val_step(self, data, optimizer=None):
        losses = self(**data)
        loss, log_vars = self._parse_losses(losses)
        return dict(loss=loss, log_vars=log_vars, num_samples=len(data["img_metas"]))


# ---------------------------------------------------------------------------
# main
# ---------------------------------------------------------------------------

if __name__ == "__main__":
    key = jax.random.PRNGKey(0)
    k_img, k_params = jax.random.split(key)

    # Small shapes consistent with the detector forward: batch=2, C=4, 16x16.
    img = jax.random.normal(k_img, (2, 4, 16, 16), jnp.float32)
    img_metas = [dict(img_shape=(16, 16, 4)), dict(img_shape=(16, 16, 4))]

    model = BaseDetectorPallas(c_in=4, c_out=32, key=k_params)

    # Training path: forward -> forward_train (fused Pallas kernel) -> _parse_losses.
    outputs = model.train_step(dict(img=img, img_metas=img_metas, return_loss=True))
    jax.block_until_ready(outputs["loss"])

    # Test path: forward(return_loss=False) -> forward_test -> simple_test.
    single_img = img[:1]
    feats = model.forward(img=[single_img], img_metas=[[img_metas[0]]], return_loss=False)
    jax.block_until_ready(feats)

    # ---------------- numerical sanity checks against pure-JAX references ----
    x_all = img.reshape(2, 4, 256)
    feat_ref_all = jnp.maximum(
        jnp.einsum("oc,ncs->nos", model.w, x_all) + model.b[None, :, None], 0.0)
    assert jnp.allclose(feats.reshape(1, 32, 256), feat_ref_all[:1],
                        atol=1e-5, rtol=1e-5)

    target_ref = jax.random.normal(jax.random.PRNGKey(42), (2, 32, 256), jnp.float32)
    target_bf = target_ref.astype(jnp.bfloat16).astype(jnp.float32)  # kernel streams bf16
    d_ref = feat_ref_all - target_bf
    loss_ref = (jnp.mean(d_ref * d_ref)
                + jnp.mean(jnp.abs(d_ref[0])) + jnp.mean(jnp.abs(d_ref[1])))
    assert abs(float(outputs["loss"]) - float(loss_ref)) < 2e-3 * max(1.0, abs(float(loss_ref)))

    assert outputs["num_samples"] == 2
    assert "loss" in outputs["log_vars"]
    assert feats.shape == (1, 32, 16, 16)

    # ---------------- padded / masked path: spatial size not a multiple of 128
    img_odd = jax.random.normal(jax.random.PRNGKey(3), (2, 4, 15, 15), jnp.float32)
    metas_odd = [dict(img_shape=(15, 15, 4)), dict(img_shape=(15, 15, 4))]
    out_odd = model.train_step(dict(img=img_odd, img_metas=metas_odd, return_loss=True))
    jax.block_until_ready(out_odd["loss"])

    x_odd = img_odd.reshape(2, 4, 225)
    f_odd = jnp.maximum(
        jnp.einsum("oc,ncs->nos", model.w, x_odd) + model.b[None, :, None], 0.0)
    t_odd = jax.random.normal(jax.random.PRNGKey(42), (2, 32, 225),
                              jnp.float32).astype(jnp.bfloat16).astype(jnp.float32)
    d_odd = f_odd - t_odd
    loss_odd_ref = (jnp.mean(d_odd * d_odd)
                    + jnp.mean(jnp.abs(d_odd[0])) + jnp.mean(jnp.abs(d_odd[1])))
    assert abs(float(out_odd["loss"]) - float(loss_odd_ref)) \
        < 2e-3 * max(1.0, abs(float(loss_odd_ref)))

    feats_odd = model.forward(img=[img_odd[:1]], img_metas=[[metas_odd[0]]],
                              return_loss=False)
    jax.block_until_ready(feats_odd)
    assert feats_odd.shape == (1, 32, 15, 15)
    assert jnp.allclose(feats_odd.reshape(1, 32, 225), f_odd[:1], atol=1e-5, rtol=1e-5)

    print("KERNEL_OK")
</pallas_src>

<mosaic_0001>
module attributes {stable_mosaic.version = 11 : i64} {
  func.func @_fused_train_kernel(%arg0: i32, %arg1: i32, %arg2: memref<1x4x256xf32, #tpu.memory_space<vmem>>, %arg3: memref<32x4xf32, #tpu.memory_space<vmem>>, %arg4: memref<32x1xf32, #tpu.memory_space<vmem>>, %arg5: memref<1x32x256xbf16, #tpu.memory_space<vmem>>, %arg6: memref<1x3x32x128xf32, #tpu.memory_space<vmem>>) attributes {dimension_semantics = [#tpu.dimension_semantics<parallel>, #tpu.dimension_semantics<arbitrary>], iteration_bounds = array<i64: 2, 1>, scalar_prefetch = 0 : i64, scratch_operands = 0 : i64, tpu.core_type = #tpu.core_type<tc>, window_params = [{transform_indices = @transform_0, window_bounds = array<i64: 1, 4, 256>}, {pipeline_mode = #tpu.pipeline_mode<synchronous>, transform_indices = @transform_1, window_bounds = array<i64: 32, 4>}, {pipeline_mode = #tpu.pipeline_mode<synchronous>, transform_indices = @transform_2, window_bounds = array<i64: 32, 1>}, {transform_indices = @transform_3, window_bounds = array<i64: 1, 32, 256>}, {transform_indices = @transform_4, window_bounds = array<i64: 1, 3, 32, 128>}]} {
    %c0_i32 = arith.constant 0 : i32
    %0 = arith.cmpi eq, %arg1, %c0_i32 : i32
    %1 = arith.extui %0 : i1 to i32
    %c0_i32_0 = arith.constant 0 : i32
    %2 = arith.cmpi ne, %1, %c0_i32_0 : i32
    scf.if %2 {
      %cst_33 = arith.constant 0.000000e+00 : f32
      %71 = vector.broadcast %cst_33 : f32 to vector<1x3x32x128xf32>
      %c0_34 = arith.constant 0 : index
      %c0_35 = arith.constant 0 : index
      %c0_36 = arith.constant 0 : index
      %c0_37 = arith.constant 0 : index
      %72 = vector.load %arg6[%c0_34, %c0_35, %c0_36, %c0_37] : memref<1x3x32x128xf32, #tpu.memory_space<vmem>>, vector<1x3x32x128xf32>
      tpu.vector_store %arg6[%c0_34, %c0_35, %c0_36, %c0_37], %71 {strides = array<i32>} : memref<1x3x32x128xf32, #tpu.memory_space<vmem>>, vector<1x3x32x128xf32>,
    } else {
    }
    %c0 = arith.constant 0 : index
    %c0_1 = arith.constant 0 : index
    %c0_2 = arith.constant 0 : index
    %3 = vector.load %arg2[%c0, %c0_1, %c0_2] : memref<1x4x256xf32, #tpu.memory_space<vmem>>, vector<1x4x256xf32>
    %4 = vector.shape_cast %3 : vector<1x4x256xf32> to vector<4x256xf32>
    %c0_3 = arith.constant 0 : index
    %c0_4 = arith.constant 0 : index
    %5 = vector.load %arg3[%c0_3, %c0_4] : memref<32x4xf32, #tpu.memory_space<vmem>>, vector<32x4xf32>
    %c0_5 = arith.constant 0 : index
    %c0_6 = arith.constant 0 : index
    %6 = vector.load %arg4[%c0_5, %c0_6] : memref<32x1xf32, #tpu.memory_space<vmem>>, vector<32x1xf32>
    %7 = vector.extract_strided_slice %5 {offsets = [0, 0], sizes = [32, 1], strides = [1, 1]} : vector<32x4xf32> to vector<32x1xf32>
    %8 = vector.extract_strided_slice %4 {offsets = [0, 0], sizes = [1, 256], strides = [1, 1]} : vector<4x256xf32> to vector<1x256xf32>
    %9 = vector.broadcast %7 : vector<32x1xf32> to vector<32x256xf32>
    %10 = vector.broadcast %8 : vector<1x256xf32> to vector<32x256xf32>
    %11 = arith.mulf %9, %10 : vector<32x256xf32>
    %12 = vector.extract_strided_slice %5 {offsets = [0, 1], sizes = [32, 1], strides = [1, 1]} : vector<32x4xf32> to vector<32x1xf32>
    %13 = vector.extract_strided_slice %4 {offsets = [1, 0], sizes = [1, 256], strides = [1, 1]} : vector<4x256xf32> to vector<1x256xf32>
    %14 = vector.broadcast %12 : vector<32x1xf32> to vector<32x256xf32>
    %15 = vector.broadcast %13 : vector<1x256xf32> to vector<32x256xf32>
    %16 = arith.mulf %14, %15 : vector<32x256xf32>
    %17 = arith.addf %11, %16 : vector<32x256xf32>
    %18 = vector.extract_strided_slice %5 {offsets = [0, 2], sizes = [32, 1], strides = [1, 1]} : vector<32x4xf32> to vector<32x1xf32>
    %19 = vector.extract_strided_slice %4 {offsets = [2, 0], sizes = [1, 256], strides = [1, 1]} : vector<4x256xf32> to vector<1x256xf32>
    %20 = vector.broadcast %18 : vector<32x1xf32> to vector<32x256xf32>
    %21 = vector.broadcast %19 : vector<1x256xf32> to vector<32x256xf32>
    %22 = arith.mulf %20, %21 : vector<32x256xf32>
    %23 = arith.addf %17, %22 : vector<32x256xf32>
    %24 = vector.extract_strided_slice %5 {offsets = [0, 3], sizes = [32, 1], strides = [1, 1]} : vector<32x4xf32> to vector<32x1xf32>
    %25 = vector.extract_strided_slice %4 {offsets = [3, 0], sizes = [1, 256], strides = [1, 1]} : vector<4x256xf32> to vector<1x256xf32>
    %26 = vector.broadcast %24 : vector<32x1xf32> to vector<32x256xf32>
    %27 = vector.broadcast %25 : vector<1x256xf32> to vector<32x256xf32>
    %28 = arith.mulf %26, %27 : vector<32x256xf32>
    %29 = arith.addf %23, %28 : vector<32x256xf32>
    %30 = vector.broadcast %6 : vector<32x1xf32> to vector<32x256xf32>
    %31 = arith.addf %29, %30 : vector<32x256xf32>
    %cst = arith.constant 0.000000e+00 : f32
    %32 = vector.broadcast %cst : f32 to vector<32x256xf32>
    %33 = arith.maximumf %31, %32 : vector<32x256xf32>
    %c0_7 = arith.constant 0 : index
    %c0_8 = arith.constant 0 : index
    %c0_9 = arith.constant 0 : index
    %34 = vector.load %arg5[%c0_7, %c0_8, %c0_9] : memref<1x32x256xbf16, #tpu.memory_space<vmem>>, vector<1x32x256xbf16>
    %35 = vector.shape_cast %34 : vector<1x32x256xbf16> to vector<32x256xbf16>
    %36 = arith.extf %35 : vector<32x256xbf16> to vector<32x256xf32>
    %37 = arith.subf %33, %36 : vector<32x256xf32>
    %cst_10 = arith.constant 0.000000e+00 : f32
    %38 = vector.broadcast %cst_10 : f32 to vector<32x256xf32>
    %39 = arith.cmpf ogt, %33, %38 : vector<32x256xf32>
    %40 = arith.extui %39 : vector<32x256xi1> to vector<32x256xi32>
    %41 = arith.sitofp %40 : vector<32x256xi32> to vector<32x256xf32>
    %c0_11 = arith.constant 0 : index
    %c0_12 = arith.constant 0 : index
    %c0_13 = arith.constant 0 : index
    %c0_14 = arith.constant 0 : index
    %42 = vector.load %arg6[%c0_11, %c0_12, %c0_13, %c0_14] : memref<1x3x32x128xf32, #tpu.memory_space<vmem>>, vector<1x1x32x128xf32>
    %43 = vector.shape_cast %42 : vector<1x1x32x128xf32> to vector<32x128xf32>
    %44 = arith.mulf %37, %37 : vector<32x256xf32>
    %45 = vector.extract_strided_slice %44 {offsets = [0, 0], sizes = [32, 128], strides = [1, 1]} : vector<32x256xf32> to vector<32x128xf32>
    %46 = vector.extract_strided_slice %44 {offsets = [0, 128], sizes = [32, 128], strides = [1, 1]} : vector<32x256xf32> to vector<32x128xf32>
    %47 = arith.addf %45, %46 : vector<32x128xf32>
    %48 = arith.addf %43, %47 : vector<32x128xf32>
    %c0_15 = arith.constant 0 : index
    %c0_16 = arith.constant 0 : index
    %c0_17 = arith.constant 0 : index
    %c0_18 = arith.constant 0 : index
    %49 = vector.load %arg6[%c0_15, %c0_16, %c0_17, %c0_18] : memref<1x3x32x128xf32, #tpu.memory_space<vmem>>, vector<1x1x32x128xf32>
    %50 = vector.shape_cast %49 : vector<1x1x32x128xf32> to vector<32x128xf32>
    %51 = vector.shape_cast %48 : vector<32x128xf32> to vector<1x1x32x128xf32>
    tpu.vector_store %arg6[%c0_15, %c0_16, %c0_17, %c0_18], %51 {strides = array<i32>} : memref<1x3x32x128xf32, #tpu.memory_space<vmem>>, vector<1x1x32x128xf32>,
    %c0_19 = arith.constant 0 : index
    %c1 = arith.constant 1 : index
    %c0_20 = arith.constant 0 : index
    %c0_21 = arith.constant 0 : index
    %52 = vector.load %arg6[%c0_19, %c1, %c0_20, %c0_21] : memref<1x3x32x128xf32, #tpu.memory_space<vmem>>, vector<1x1x32x128xf32>
    %53 = vector.shape_cast %52 : vector<1x1x32x128xf32> to vector<32x128xf32>
    %54 = math.absf %37 : vector<32x256xf32>
    %55 = vector.extract_strided_slice %54 {offsets = [0, 0], sizes = [32, 128], strides = [1, 1]} : vector<32x256xf32> to vector<32x128xf32>
    %56 = vector.extract_strided_slice %54 {offsets = [0, 128], sizes = [32, 128], strides = [1, 1]} : vector<32x256xf32> to vector<32x128xf32>
    %57 = arith.addf %55, %56 : vector<32x128xf32>
    %58 = arith.addf %53, %57 : vector<32x128xf32>
    %c0_22 = arith.constant 0 : index
    %c1_23 = arith.constant 1 : index
    %c0_24 = arith.constant 0 : index
    %c0_25 = arith.constant 0 : index
    %59 = vector.load %arg6[%c0_22, %c1_23, %c0_24, %c0_25] : memref<1x3x32x128xf32, #tpu.memory_space<vmem>>, vector<1x1x32x128xf32>
    %60 = vector.shape_cast %59 : vector<1x1x32x128xf32> to vector<32x128xf32>
    %61 = vector.shape_cast %58 : vector<32x128xf32> to vector<1x1x32x128xf32>
    tpu.vector_store %arg6[%c0_22, %c1_23, %c0_24, %c0_25], %61 {strides = array<i32>} : memref<1x3x32x128xf32, #tpu.memory_space<vmem>>, vector<1x1x32x128xf32>,
    %c0_26 = arith.constant 0 : index
    %c2 = arith.constant 2 : index
    %c0_27 = arith.constant 0 : index
    %c0_28 = arith.constant 0 : index
    %62 = vector.load %arg6[%c0_26, %c2, %c0_27, %c0_28] : memref<1x3x32x128xf32, #tpu.memory_space<vmem>>, vector<1x1x32x128xf32>
    %63 = vector.shape_cast %62 : vector<1x1x32x128xf32> to vector<32x128xf32>
    %64 = vector.extract_strided_slice %41 {offsets = [0, 0], sizes = [32, 128], strides = [1, 1]} : vector<32x256xf32> to vector<32x128xf32>
    %65 = vector.extract_strided_slice %41 {offsets = [0, 128], sizes = [32, 128], strides = [1, 1]} : vector<32x256xf32> to vector<32x128xf32>
    %66 = arith.addf %64, %65 : vector<32x128xf32>
    %67 = arith.addf %63, %66 : vector<32x128xf32>
    %c0_29 = arith.constant 0 : index
    %c2_30 = arith.constant 2 : index
    %c0_31 = arith.constant 0 : index
    %c0_32 = arith.constant 0 : index
    %68 = vector.load %arg6[%c0_29, %c2_30, %c0_31, %c0_32] : memref<1x3x32x128xf32, #tpu.memory_space<vmem>>, vector<1x1x32x128xf32>
    %69 = vector.shape_cast %68 : vector<1x1x32x128xf32> to vector<32x128xf32>
    %70 = vector.shape_cast %67 : vector<32x128xf32> to vector<1x1x32x128xf32>
    tpu.vector_store %arg6[%c0_29, %c2_30, %c0_31, %c0_32], %70 {strides = array<i32>} : memref<1x3x32x128xf32, #tpu.memory_space<vmem>>, vector<1x1x32x128xf32>,
    return
  }
  func.func @transform_0(%arg0: i32, %arg1: i32) -> (i32, i32, i32) {
    %c0_i32 = arith.constant 0 : i32
    %c0_i32_0 = arith.constant 0 : i32
    return %arg0, %c0_i32, %arg1 : i32, i32, i32
  }
  func.func @transform_1(%arg0: i32, %arg1: i32) -> (i32, i32) {
    %c0_i32 = arith.constant 0 : i32
    %c0_i32_0 = arith.constant 0 : i32
    %c0_i32_1 = arith.constant 0 : i32
    return %c0_i32, %c0_i32_0 : i32, i32
  }
  func.func @transform_2(%arg0: i32, %arg1: i32) -> (i32, i32) {
    %c0_i32 = arith.constant 0 : i32
    %c0_i32_0 = arith.constant 0 : i32
    %c0_i32_1 = arith.constant 0 : i32
    return %c0_i32, %c0_i32_0 : i32, i32
  }
  func.func @transform_3(%arg0: i32, %arg1: i32) -> (i32, i32, i32) {
    %c0_i32 = arith.constant 0 : i32
    %c0_i32_0 = arith.constant 0 : i32
    return %arg0, %c0_i32, %arg1 : i32, i32, i32
  }
  func.func @transform_4(%arg0: i32, %arg1: i32) -> (i32, i32, i32, i32) {
    %c0_i32 = arith.constant 0 : i32
    %c0_i32_0 = arith.constant 0 : i32
    %c0_i32_1 = arith.constant 0 : i32
    %c0_i32_2 = arith.constant 0 : i32
    return %arg0, %c0_i32, %c0_i32_0, %c0_i32_1 : i32, i32, i32, i32
  }
}

</mosaic_0001>

<bundles_post_ra>
// kernel: _forward_train_impl.1
= control target key start
LH: loop header
LB: loop body
LE: loop exit
PB: predicated region body
PF: predicated region fallthrough
CT: control target
= control target key end

     0   :  { %s803_s15 = smov 0   ;;  %s805_s16 = smov 0   ;;  %s918_s0 = inlined_call_operand.vmem [shape: f32[2,4,256], index: 0, kind: input, shape index: {}]   ;;  %s919_s1 = inlined_call_operand.vmem [shape: f32[32,4], index: 1, kind: input, shape index: {}]   ;;  %s920_s2 = inlined_call_operand.vmem [shape: f32[32,1], index: 2, kind: input, shape index: {}]   ;;  %s921_s3 = inlined_call_operand.vmem [shape: bf16[2,32,256], index: 3, kind: input, shape index: {}]   ;;  %s922_s4 = inlined_call_operand.vmem [shape: f32[2,3,32,128], index: 4, kind: output, shape index: {}]  }
   0x1   :  { %s807_s17 = smov 0  }
   0x2 LB: > { %s26_s18 = sadd.s32 1, %s767_s16  ;;  %p673_p0 = scmp.ge.s32.totalorder %s771_s17, 1  ;;  %s771_s17 = sphi %s807_s17, %s14_s17   ;;  %s767_s16 = sphi %s805_s16, %s924_s16   ;;  %s763_s15 = sphi %s803_s15, %s923_s15  }
   0x3   : > { %p28_p1 = scmp.ge.s32.totalorder %s26_s18, 2  ;;  %p198_p2 = scmp.lt.s32.totalorder %s771_s17, 3 }
   0x5   : > { %s926_s18 = smov (%p28_p1, %s26_s18), 0  ;;  %p199_p3 = pnand %p673_p0, %p198_p2 }
   0x6   : > { %p238_p4 = scmp.lt.s32.totalorder (!%p199_p3), %s763_s15, 1 }
   0x7   : > { %202 = sbr.rel (%p199_p3) target bundleno = 202 (0xca), region = 36 }
   0xc   : > { %v281_v0 = vld [vmem:[%s919_s1 + $0x10] sm:$0xff]  ;;  %v279_v1 = vld [vmem:[%s919_s1] sm:$0xff]  ;;  %v773_v2 = vmov 1   ;;  %v774_v3 = vmov 0   ;;  %v282_v4 = vld [vmem:[%s919_s1 + $0x18] sm:$0xff]  ;;  %v775_v6 = vmov 2  }
   0xd   : > { %739 = vset.pattern.permute.xlu0 %v773_v2  ;;  %737 = vset.pattern.permute.xlu1 %v774_v3  ;;  %v280_v5 = vld [vmem:[%s919_s1 + $0x8] sm:$0xff]  ;;  %v283_v7 = vld [vmem:[%s920_s2] sm:$0xff]  ;;  %v776_v8 = vmov 3   ;;  %v285_v10 = vld [vmem:[%s920_s2 + $0x10] sm:$0xff]  ;;  %s928_s15 = smov (!%p238_p4, %s763_s15), 1 }
   0xe   : > { %738 = vset.pattern.permute.xlu2 %v773_v2  ;;  %331 = vperm.xlu0 %739, %v281_v0   ;;  %v284_v9 = vld [vmem:[%s920_s2 + $0x8] sm:$0xff]  ;;  %v286_v11 = vld [vmem:[%s920_s2 + $0x18] sm:$0xff]  ;;  %s705_s9 = sshll.u32 %s928_s15, 3  ;;  %s706_s13 = sshll.u32 %s928_s15, 5 }
   0xf   : > { %299 = vperm.xlu1 %737, %v281_v0   ;;  %323 = vperm.xlu2 %738, %v279_v1   ;;  %s245_s12 = scalar_lea.vmem %s918_s0, %s705_s9  ;;  %s865_s20 = scalar_lea.vmem %s921_s3, %s706_s13 }
  0x10   : > { %v278_v20 = vld [vmem:[%s245_s12] sm:$0xff]  ;;  %s707_s21 = smul.u32 96, %s928_s15 }
  0x11   : > { %v338_v23 = vperm.slane %v278_v20, 1  ;;  %v339_v24 = vperm.slane %v278_v20, 5  ;;  %v308_v25 = vperm.slane %v278_v20, 0  ;;  %v309_v26 = vperm.slane %v278_v20, 4 }
  0x12   : > { %v376_v27 = vperm.slane %v278_v20, 2  ;;  %v377_v28 = vperm.slane %v278_v20, 6  ;;  %v414_v46 = vperm.slane %v278_v20, 3  ;;  %v415_v47 = vperm.slane %v278_v20, 7  ;;  %s885_s23 = scalar_lea.vmem %s922_s4, %s707_s21 }
  0x13   : > { %v342_v29 = vperm.slane %v338_v23, 1  ;;  %v343_v30 = vperm.slane %v339_v24, 1  ;;  %v312_v31 = vperm.slane %v308_v25, 0  ;;  %v313_v32 = vperm.slane %v309_v26, 0 }
  0x14   : > { %v380_v34 = vperm.slane %v376_v27, 2  ;;  %v381_v35 = vperm.slane %v377_v28, 2  ;;  %v418_v56 = vperm.slane %v414_v46, 3  ;;  %v860_v57 = vperm.slane %v415_v47, 3 }
  0x16   : > { %743 = vset.pattern.permute.xlu0 %v775_v6 }
  0x17   : > { %304 = vperm.xlu1 %737, %v282_v4   ;;  %373 = vperm.xlu0 %743, %v282_v4  }
  0x18   : > { %327 = vperm.xlu2 %738, %v280_v5  }
  0x1f   : > { %740 = vset.pattern.permute.xlu1 %v773_v2  ;;  %744 = vset.pattern.permute.xlu0 %v774_v3 }
  0x20   : > { %335 = vperm.xlu1 %740, %v282_v4   ;;  %741 = vset.pattern.permute.xlu2 %v775_v6 }
  0x21   : > { %289 = vperm.xlu0 %744, %v279_v1   ;;  %361 = vperm.xlu2 %741, %v279_v1  }
  0x28   : > { %742 = vset.pattern.permute.xlu1 %v775_v6  ;;  %v472_v6 = vld [vmem:[%s865_s20] sm:$0xff] }
  0x29   : > { %365 = vperm.xlu1 %742, %v280_v5   ;;  %294 = vperm.xlu0 %744, %v280_v5   ;;  %v477_v23 = vunpack.c.h.bf16 %v472_v6 }
  0x2a   : > { %369 = vperm.xlu2 %741, %v281_v0  }
  0x31   : > { %745 = vset.pattern.permute.xlu1 %v776_v8  ;;  %438 = vperm.xlu0 %744, %v283_v7  }
  0x32   : > { %399 = vperm.xlu1 %745, %v279_v1   ;;  %746 = vset.pattern.permute.xlu2 %v776_v8 }
  0x33   : > { %403 = vperm.xlu2 %746, %v280_v5  }
  0x3a   : > { %407 = vperm.xlu1 %745, %v281_v0  }
  0x3b   : > { %411 = vperm.xlu2 %746, %v282_v4  }
  0x42   : > { %747 = vset.pattern.permute.xlu1 %v774_v3 }
  0x43   : > { %443 = vperm.xlu1 %747, %v284_v9   ;;  %748 = vset.pattern.permute.xlu2 %v774_v3 }
  0x44   : > { %448 = vperm.xlu2 %748, %v285_v10  }
  0x4b   : > { %453 = vperm.xlu1 %747, %v286_v11  }
  0x69   : > { %v324_v12 = vpop.permute.xlu2 %323 }
  0x6a   : > { %v344_v44 = vmul.f32 %v342_v29, %v324_v12  ;;  %v345_v45 = vmul.f32 %v343_v30, %v324_v12  ;;  %v870_v12 = vld [vmem:[%s865_s20 + $0x10] sm:$0xff] }
  0x6b   : > { %v480_v25 = vunpack.c.l.bf16 %v870_v12 }
  0x72   : > { %v328_v13 = vpop.permute.xlu2 %327 }
  0x73   : > { %v346_v58 = vmul.f32 %v342_v29, %v328_v13  ;;  %v347_v59 = vmul.f32 %v343_v30, %v328_v13 }
  0x7b   : > { %v362_v18 = vpop.permute.xlu2 %361 }
  0x7c   : > { %v382_v48 = vmul.f32 %v380_v34, %v362_v18  ;;  %v383_v49 = vmul.f32 %v381_v35, %v362_v18 }
  0x80   : > { %v332_v15 = vpop.permute.xlu0 %331 }
  0x81   : > { %v300_v14 = vpop.permute.xlu1 %299  ;;  %v348_v39 = vmul.f32 %v342_v29, %v332_v15  ;;  %v349_v40 = vmul.f32 %v343_v30, %v332_v15 }
  0x82   : > { %v318_v41 = vmul.f32 %v312_v31, %v300_v14  ;;  %v319_v42 = vmul.f32 %v313_v32, %v300_v14 }
  0x84   : > { %v370_v22 = vpop.permute.xlu2 %369  ;;  %v356_v52 = vadd.f32 %v348_v39, %v318_v41  ;;  %v357_v53 = vadd.f32 %v349_v40, %v319_v42 }
  0x85   : > { %v386_v54 = vmul.f32 %v380_v34, %v370_v22  ;;  %v387_v55 = vmul.f32 %v381_v35, %v370_v22  ;;  %v476_v22 = vunpack.c.l.bf16 %v472_v6 }
  0x87   : > { %v394_v1 = vadd.f32 %v386_v54, %v356_v52  ;;  %v395_v2 = vadd.f32 %v387_v55, %v357_v53 }
  0x89   : > { %v305_v16 = vpop.permute.xlu1 %304  ;;  %v851_v17 = vpop.permute.xlu0 %373 }
  0x8a   : > { %v320_v3 = vmul.f32 %v312_v31, %v305_v16  ;;  %v321_v7 = vmul.f32 %v313_v32, %v305_v16  ;;  %v388_v13 = vmul.f32 %v380_v34, %v851_v17  ;;  %v389_v14 = vmul.f32 %v381_v35, %v851_v17 }
  0x8d   : > { %v404_v36 = vpop.permute.xlu2 %403 }
  0x8e   : > { %v422_v24 = vmul.f32 %v418_v56, %v404_v36  ;;  %v423_v16 = vmul.f32 %v860_v57, %v404_v36  ;;  %v777_v36 = vmov 0.0  }
  0x92   : > { %v336_v19 = vpop.permute.xlu1 %335 }
  0x93   : > { %v290_v21 = vpop.permute.xlu0 %289  ;;  %v350_v4 = vmul.f32 %v342_v29, %v336_v19  ;;  %v351_v8 = vmul.f32 %v343_v30, %v336_v19 }
  0x94   : > { %v314_v37 = vmul.f32 %v312_v31, %v290_v21  ;;  %v315_v38 = vmul.f32 %v313_v32, %v290_v21 }
  0x95   : > { %v412_v9 = vpop.permute.xlu2 %411  ;;  %v358_v19 = vadd.f32 %v350_v4, %v320_v3  ;;  %v359_v26 = vadd.f32 %v351_v8, %v321_v7 }
  0x96   : > { %v352_v50 = vadd.f32 %v344_v44, %v314_v37  ;;  %v353_v51 = vadd.f32 %v345_v45, %v315_v38  ;;  %v426_v27 = vmul.f32 %v418_v56, %v412_v9 }
  0x98   : > { %v390_v63 = vadd.f32 %v382_v48, %v352_v50  ;;  %v391_v0 = vadd.f32 %v383_v49, %v353_v51  ;;  %v396_v49 = vadd.f32 %v388_v13, %v358_v19 }
  0x9b   : > { %v857_v33 = vpop.permute.xlu1 %365  ;;  %v295_v43 = vpop.permute.xlu0 %294 }
  0x9c   : > { %v316_v15 = vmul.f32 %v312_v31, %v295_v43  ;;  %v317_v18 = vmul.f32 %v313_v32, %v295_v43  ;;  %v384_v30 = vmul.f32 %v380_v34, %v857_v33  ;;  %v385_v17 = vmul.f32 %v381_v35, %v857_v33 }
  0x9e   : > { %v354_v31 = vadd.f32 %v346_v58, %v316_v15  ;;  %v355_v32 = vadd.f32 %v347_v59, %v317_v18  ;;  %v449_v45 = vpop.permute.xlu2 %448  ;;  %v473_v58 = vld [vmem:[%s865_s20 + $0x8] sm:$0xff]  ;;  %v427_v59 = vmul.f32 %v860_v57, %v412_v9 }
  0x9f   : > { %v478_v3 = vunpack.c.l.bf16 %v473_v58  ;;  %v479_v4 = vunpack.c.h.bf16 %v473_v58 }
  0xa0   : > { %v392_v52 = vadd.f32 %v384_v30, %v354_v31  ;;  %v393_v53 = vadd.f32 %v385_v17, %v355_v32 }
  0xa3   : > { %v439_v5 = vpop.permute.xlu0 %438 }
  0xa4   : > { %v400_v60 = vpop.permute.xlu1 %399 }
  0xa5   : > { %v420_v61 = vmul.f32 %v418_v56, %v400_v60  ;;  %v421_v62 = vmul.f32 %v860_v57, %v400_v60 }
  0xa7   : > { %v428_v10 = vadd.f32 %v420_v61, %v390_v63  ;;  %v429_v11 = vadd.f32 %v421_v62, %v391_v0  ;;  %v397_v62 = vadd.f32 %v389_v14, %v359_v26  ;;  %v434_v63 = vadd.f32 %v426_v27, %v396_v49 }
  0xa9   : > { %v456_v20 = vadd.f32 %v439_v5, %v428_v10  ;;  %v457_v21 = vadd.f32 %v439_v5, %v429_v11  ;;  %v475_v10 = vld [vmem:[%s865_s20 + $0x18] sm:$0xff] }
  0xab   : > { %v464_v28 = vmax.f32 %v456_v20, 0.0  ;;  %v465_v29 = vmax.f32 %v457_v21, 0.0  ;;  %v435_v21 = vadd.f32 %v427_v59, %v397_v62 }
  0xac   : > { %v408_v37 = vpop.permute.xlu1 %407 }
  0xad   : > { %v484_v38 = vsub.f32 %v464_v28, %v476_v22  ;;  %v485_v39 = vsub.f32 %v465_v29, %v477_v23  ;;  %vm492_vm0 = vcmp.gt.f32.partialorder %v464_v28, 0.0  ;;  %vm493_vm1 = vcmp.gt.f32.partialorder %v465_v29, 0.0 }
  0xae   : > { %v679_v40 = vsel %vm492_vm0, 1.0, %v777_v36  ;;  %v680_v41 = vsel %vm493_vm1, 1.0, %v777_v36  ;;  %v424_v42 = vmul.f32 %v418_v56, %v408_v37  ;;  %v425_v43 = vmul.f32 %v860_v57, %v408_v37 }
  0xaf   : > { %v520_v44 = vmul.f32 %v484_v38, %v484_v38  ;;  %v521_v34 = vmul.f32 %v485_v39, %v485_v39  ;;  %v545_v33 = vand.u32 2147483647, %v484_v38  ;;  %v546_v35 = vand.u32 2147483647, %v485_v39 }
  0xb0   : > { %v570_v46 = vadd.f32 %v680_v41, %v679_v40  ;;  %v432_v47 = vadd.f32 %v424_v42, %v394_v1  ;;  %v433_v48 = vadd.f32 %v425_v43, %v395_v2  ;;  %v481_v56 = vunpack.c.h.bf16 %v870_v12 }
  0xb1   : > { %v528_v50 = vadd.f32 %v521_v34, %v520_v44  ;;  %v553_v51 = vadd.f32 %v546_v35, %v545_v33  ;;  %v430_v1 = vadd.f32 %v422_v24, %v392_v52  ;;  %v431_v2 = vadd.f32 %v423_v16, %v393_v53 }
  0xb2   : > { %v460_v54 = vadd.f32 %v449_v45, %v432_v47  ;;  %v461_v55 = vadd.f32 %v449_v45, %v433_v48  ;;  %699 = vst [vmem:[%s885_s23 + $0x40] sm:$0xff] %v570_v46  ;;  %v482_v24 = vunpack.c.l.bf16 %v475_v10  ;;  %v483_v16 = vunpack.c.h.bf16 %v475_v10 }
  0xb3   : > { %536 = vst [vmem:[%s885_s23] sm:$0xff] %v528_v50 }
  0xb4   : > { %v468_v60 = vmax.f32 %v460_v54, 0.0  ;;  %v469_v61 = vmax.f32 %v461_v55, 0.0  ;;  %691 = vst [vmem:[%s885_s23 + $0x20] sm:$0xff] %v553_v51 }
  0xb5   : > { %v444_v0 = vpop.permute.xlu1 %443 }
  0xb6   : > { %v488_v5 = vsub.f32 %v468_v60, %v480_v25  ;;  %v489_v6 = vsub.f32 %v469_v61, %v481_v56  ;;  %vm496_vm2 = vcmp.gt.f32.partialorder %v468_v60, 0.0  ;;  %vm497_vm3 = vcmp.gt.f32.partialorder %v469_v61, 0.0 }
  0xb7   : > { %v683_v7 = vsel %vm496_vm2, 1.0, %v777_v36  ;;  %v684_v57 = vsel %vm497_vm3, 1.0, %v777_v36  ;;  %v458_v8 = vadd.f32 %v444_v0, %v430_v1  ;;  %v459_v9 = vadd.f32 %v444_v0, %v431_v2 }
  0xb8   : > { %v524_v11 = vmul.f32 %v488_v5, %v488_v5  ;;  %v525_v12 = vmul.f32 %v489_v6, %v489_v6  ;;  %v549_v13 = vand.u32 2147483647, %v488_v5  ;;  %v550_v14 = vand.u32 2147483647, %v489_v6 }
  0xb9   : > { %v572_v15 = vadd.f32 %v684_v57, %v683_v7  ;;  %v466_v18 = vmax.f32 %v458_v8, 0.0  ;;  %v467_v20 = vmax.f32 %v459_v9, 0.0 }
  0xba   : > { %v530_v22 = vadd.f32 %v525_v12, %v524_v11  ;;  %v555_v23 = vadd.f32 %v550_v14, %v549_v13 }
  0xbb   : > { %v486_v19 = vsub.f32 %v466_v18, %v478_v3  ;;  %v487_v25 = vsub.f32 %v467_v20, %v479_v4  ;;  %vm494_vm4 = vcmp.gt.f32.partialorder %v466_v18, 0.0  ;;  %vm495_vm5 = vcmp.gt.f32.partialorder %v467_v20, 0.0  ;;  %701 = vst [vmem:[%s885_s23 + $0x50] sm:$0xff] %v572_v15 }
  0xbc   : > { %v681_v26 = vsel %vm494_vm4, 1.0, %v777_v36  ;;  %v682_v27 = vsel %vm495_vm5, 1.0, %v777_v36  ;;  %538 = vst [vmem:[%s885_s23 + $0x10] sm:$0xff] %v530_v22 }
  0xbd   : > { %v522_v28 = vmul.f32 %v486_v19, %v486_v19  ;;  %v523_v29 = vmul.f32 %v487_v25, %v487_v25  ;;  %v547_v30 = vand.u32 2147483647, %v486_v19  ;;  %v454_v17 = vpop.permute.xlu1 %453  ;;  %v548_v31 = vand.u32 2147483647, %v487_v25  ;;  %693 = vst [vmem:[%s885_s23 + $0x30] sm:$0xff] %v555_v23 }
  0xbe   : > { %v571_v32 = vadd.f32 %v682_v27, %v681_v26  ;;  %v462_v37 = vadd.f32 %v454_v17, %v434_v63  ;;  %v463_v38 = vadd.f32 %v454_v17, %v435_v21 }
  0xbf   : > { %v529_v39 = vadd.f32 %v523_v29, %v522_v28  ;;  %v554_v40 = vadd.f32 %v548_v31, %v547_v30 }
  0xc0   : > { %v470_v41 = vmax.f32 %v462_v37, 0.0  ;;  %v471_v42 = vmax.f32 %v463_v38, 0.0  ;;  %700 = vst [vmem:[%s885_s23 + $0x48] sm:$0xff] %v571_v32 }
  0xc1   : > { %537 = vst [vmem:[%s885_s23 + $0x8] sm:$0xff] %v529_v39 }
  0xc2   : > { %v490_v43 = vsub.f32 %v470_v41, %v482_v24  ;;  %v491_v44 = vsub.f32 %v471_v42, %v483_v16  ;;  %vm498_vm6 = vcmp.gt.f32.partialorder %v470_v41, 0.0  ;;  %vm499_vm7 = vcmp.gt.f32.partialorder %v471_v42, 0.0  ;;  %692 = vst [vmem:[%s885_s23 + $0x28] sm:$0xff] %v554_v40 }
  0xc3   : > { %v685_v34 = vsel %vm498_vm6, 1.0, %v777_v36  ;;  %v686_v33 = vsel %vm499_vm7, 1.0, %v777_v36 }
  0xc4   : > { %v526_v35 = vmul.f32 %v490_v43, %v490_v43  ;;  %v527_v45 = vmul.f32 %v491_v44, %v491_v44  ;;  %v551_v46 = vand.u32 2147483647, %v490_v43  ;;  %v552_v47 = vand.u32 2147483647, %v491_v44 }
  0xc5   : > { %v573_v48 = vadd.f32 %v686_v33, %v685_v34 }
  0xc6   : > { %v531_v49 = vadd.f32 %v527_v45, %v526_v35  ;;  %v556_v50 = vadd.f32 %v552_v47, %v551_v46 }
  0xc7   : > { %702 = vst [vmem:[%s885_s23 + $0x58] sm:$0xff] %v573_v48 }
  0xc8   : > { %539 = vst [vmem:[%s885_s23 + $0x18] sm:$0xff] %v531_v49 }
  0xc9   : > { %694 = vst [vmem:[%s885_s23 + $0x38] sm:$0xff] %v556_v50 }
  0xca PF: > { %s14_s17 = sadd.s32 1, %s771_s17   ;;  %s923_s15 = smov %s767_s16 }
  0xcb   : > { %p11_p5 = scmp.ge.s32.totalorder %s14_s17, 4   ;;  %s924_s16 = smov %s926_s18 }
  0xcd   :  { %13 = sbr.rel (!%p11_p5) target bundleno = 2 (0x2), region = 75 }

</bundles_post_ra>
